<compile_context>
chip_gen: v7x
topology: tpu7x:2x2x1
jax: 0.10.0
libtpu: 0.0.40
codegen_flags: <defaults>
</compile_context>

<pallas_src>
import jax
import jax.numpy as jnp
from jax.experimental import pallas as pl
from jax.experimental.pallas import tpu as pltpu

IN_FEATURES = 100
HIDDEN = 100
OUT_FEATURES = 10


def mlp_head_kernel(x_ref, w1_ref, b1_ref, w2_ref, b2_ref, o_ref):
    # x_ref:  (TB, 100)            activations (f32 or bf16)
    # w1_ref: (100, 100)           fc1 weight, (in, out) layout
    # b1_ref: (1, 100)   f32
    # w2_ref: (100, 10)            fc2 weight, (in, out) layout
    # b2_ref: (1, 10)    f32
    # o_ref:  (TB, 10)
    x = x_ref[...]

    # fc1: x @ W1 + b1, ReLU (f32 accumulation on the MXU)
    h = jnp.dot(x, w1_ref[...], preferred_element_type=jnp.float32)
    h = jnp.maximum(h + b1_ref[...], 0.0)

    # fc2: h @ W2 + b2 (cast h back to the weight dtype so bf16 inputs keep a
    # single-pass MXU matmul; no-op for f32).
    h = h.astype(w2_ref.dtype)
    y = jnp.dot(h, w2_ref[...], preferred_element_type=jnp.float32)
    y = y + b2_ref[...]

    o_ref[...] = y.astype(o_ref.dtype)


def _tensorcores_per_chip():
    """Best-effort detection of TensorCores per chip (2 on v7x, else 1)."""
    try:
        d = jax.devices()[0]
        if d.platform != "tpu":
            return 1
        kind = str(getattr(d, "device_kind", "")).lower()
        return 2 if "v7" in kind else 1
    except Exception:  # pragma: no cover - defensive
        return 1


def classification_head(x, w1, b1, w2, b2, *, block_rows=4096):
    """x: (B, 100); w1: (100, 100); b1: (100,); w2: (10, 100); b2: (10,).

    Weights/biases are given in the PyTorch nn.Linear (out, in) layout; the
    wrapper transposes them once to (in, out) and casts weights to x.dtype.
    Accumulation is always f32; output dtype matches x.dtype.
    """
    B = x.shape[0]

    # Batch tile: multiple of 8 (sublane requirement), capped at block_rows.
    rows8 = pl.cdiv(B, 8) * 8
    tb = min(block_rows, rows8)
    # On a 2-TensorCore chip (v7x), make sure the "parallel" batch axis has at
    # least 2 grid steps so both cores get work.
    if _tensorcores_per_chip() >= 2 and rows8 >= 16:
        half = pl.cdiv(pl.cdiv(B, 2), 8) * 8
        tb = min(tb, half)
    tb = max(8, tb)
    grid = (pl.cdiv(B, tb),)

    # One-time weight transpose to (in, out) + dtype cast; biases stay f32.
    w1_t = jnp.asarray(w1).T.astype(x.dtype)            # (100, 100)
    w2_t = jnp.asarray(w2).T.astype(x.dtype)            # (100, 10)
    b1_2d = jnp.asarray(b1).reshape(1, HIDDEN).astype(jnp.float32)
    b2_2d = jnp.asarray(b2).reshape(1, OUT_FEATURES).astype(jnp.float32)

    x_bytes = jnp.dtype(x.dtype).itemsize
    flops = 2 * B * (IN_FEATURES * HIDDEN + HIDDEN * OUT_FEATURES)
    bytes_accessed = (B * (IN_FEATURES + OUT_FEATURES) * x_bytes
                      + (HIDDEN * IN_FEATURES + OUT_FEATURES * HIDDEN) * x_bytes
                      + (HIDDEN + OUT_FEATURES) * 4)

    return pl.pallas_call(
        mlp_head_kernel,
        out_shape=jax.ShapeDtypeStruct((B, OUT_FEATURES), x.dtype),
        grid=grid,
        in_specs=[
            pl.BlockSpec((tb, IN_FEATURES), lambda i: (i, 0)),
            pl.BlockSpec((IN_FEATURES, HIDDEN), lambda i: (0, 0)),
            pl.BlockSpec((1, HIDDEN), lambda i: (0, 0)),
            pl.BlockSpec((HIDDEN, OUT_FEATURES), lambda i: (0, 0)),
            pl.BlockSpec((1, OUT_FEATURES), lambda i: (0, 0)),
        ],
        out_specs=pl.BlockSpec((tb, OUT_FEATURES), lambda i: (i, 0)),
        compiler_params=pltpu.CompilerParams(
            dimension_semantics=("parallel",),
            # x tile + lane-padded (->128) out tile, x2 buffers each:
            # tb=4096 f32 -> ~8.3 MiB, well under this limit on all chips.
            vmem_limit_bytes=32 * 1024 * 1024,
        ),
        cost_estimate=pl.CostEstimate(
            flops=flops, bytes_accessed=bytes_accessed, transcendentals=0),
    )(x, w1_t, b1_2d, w2_t, b2_2d)


def _reference(x, w1, b1, w2, b2):
    xf = x.astype(jnp.float32)
    return jnp.maximum(xf @ w1.T + b1, 0.0) @ w2.T + b2


if __name__ == "__main__":
    key = jax.random.PRNGKey(0)
    k_x, k_w1, k_b1, k_w2, k_b2, k_x2, k_x3 = jax.random.split(key, 7)

    # Deterministic synthetic parameters, PyTorch Linear layout (out, in).
    bound1 = 1.0 / (IN_FEATURES ** 0.5)
    w1 = jax.random.uniform(k_w1, (HIDDEN, IN_FEATURES), jnp.float32,
                            minval=-bound1, maxval=bound1)
    b1 = jax.random.uniform(k_b1, (HIDDEN,), jnp.float32,
                            minval=-bound1, maxval=bound1)
    bound2 = 1.0 / (HIDDEN ** 0.5)
    w2 = jax.random.uniform(k_w2, (OUT_FEATURES, HIDDEN), jnp.float32,
                            minval=-bound2, maxval=bound2)
    b2 = jax.random.uniform(k_b2, (OUT_FEATURES,), jnp.float32,
                            minval=-bound2, maxval=bound2)

    # Small batch, f32 (single grid step; block rows exceed B=8? no, tb=8).
    B = 8
    x = jax.random.normal(k_x, (B, IN_FEATURES), dtype=jnp.float32)
    out = jax.block_until_ready(classification_head(x, w1, b1, w2, b2))
    ref = _reference(x, w1, b1, w2, b2)
    assert out.shape == (B, OUT_FEATURES)
    assert jnp.allclose(out, ref, atol=1e-5, rtol=1e-5)

    # Larger batch, f32, exercising the batch grid with a clipped last block.
    B2 = 520
    x2 = jax.random.normal(k_x2, (B2, IN_FEATURES), dtype=jnp.float32)
    out2 = jax.block_until_ready(
        classification_head(x2, w1, b1, w2, b2, block_rows=256))
    ref2 = _reference(x2, w1, b1, w2, b2)
    assert out2.shape == (B2, OUT_FEATURES)
    assert jnp.allclose(out2, ref2, atol=1e-5, rtol=1e-5)

    # bf16 activation path (halves the dominant x HBM read stream).
    B3 = 256
    x3 = jax.random.normal(k_x3, (B3, IN_FEATURES), dtype=jnp.float32)
    out3 = jax.block_until_ready(
        classification_head(x3.astype(jnp.bfloat16), w1, b1, w2, b2))
    ref3 = _reference(x3, w1, b1, w2, b2)
    assert out3.shape == (B3, OUT_FEATURES)
    assert jnp.allclose(out3.astype(jnp.float32), ref3, atol=5e-2, rtol=5e-2)

    print("KERNEL_OK")
</pallas_src>

<mosaic_0001>
module attributes {stable_mosaic.version = 11 : i64} {
  func.func @mlp_head_kernel(%arg0: i32, %arg1: memref<8x100xf32, #tpu.memory_space<vmem>>, %arg2: memref<100x100xf32, #tpu.memory_space<vmem>>, %arg3: memref<1x100xf32, #tpu.memory_space<vmem>>, %arg4: memref<100x10xf32, #tpu.memory_space<vmem>>, %arg5: memref<1x10xf32, #tpu.memory_space<vmem>>, %arg6: memref<8x10xf32, #tpu.memory_space<vmem>>) attributes {dimension_semantics = [#tpu.dimension_semantics<parallel>], iteration_bounds = array<i64: 1>, scalar_prefetch = 0 : i64, scratch_operands = 0 : i64, tpu.core_type = #tpu.core_type<tc>, window_params = [{transform_indices = @transform_0, window_bounds = array<i64: 8, 100>}, {pipeline_mode = #tpu.pipeline_mode<synchronous>, transform_indices = @transform_1, window_bounds = array<i64: 100, 100>}, {pipeline_mode = #tpu.pipeline_mode<synchronous>, transform_indices = @transform_2, window_bounds = array<i64: 1, 100>}, {pipeline_mode = #tpu.pipeline_mode<synchronous>, transform_indices = @transform_3, window_bounds = array<i64: 100, 10>}, {pipeline_mode = #tpu.pipeline_mode<synchronous>, transform_indices = @transform_4, window_bounds = array<i64: 1, 10>}, {transform_indices = @transform_5, window_bounds = array<i64: 8, 10>}]} {
    %c0 = arith.constant 0 : index
    %c0_0 = arith.constant 0 : index
    %0 = vector.load %arg1[%c0, %c0_0] : memref<8x100xf32, #tpu.memory_space<vmem>>, vector<8x100xf32>
    %c0_1 = arith.constant 0 : index
    %c0_2 = arith.constant 0 : index
    %1 = vector.load %arg2[%c0_1, %c0_2] : memref<100x100xf32, #tpu.memory_space<vmem>>, vector<100x100xf32>
    %cst = arith.constant dense<0.000000e+00> : vector<8x100xf32>
    %2 = tpu.matmul %0, %1, %cst {dimension_numbers = #tpu.dot_dimension_numbers<[1], [0], [0], [1], [0, 0, 1, 1], [], []>} : vector<8x100xf32>, vector<100x100xf32>, vector<8x100xf32> -> vector<8x100xf32>
    %c0_3 = arith.constant 0 : index
    %c0_4 = arith.constant 0 : index
    %3 = vector.load %arg3[%c0_3, %c0_4] : memref<1x100xf32, #tpu.memory_space<vmem>>, vector<1x100xf32>
    %4 = vector.broadcast %3 : vector<1x100xf32> to vector<8x100xf32>
    %5 = arith.addf %2, %4 : vector<8x100xf32>
    %cst_5 = arith.constant 0.000000e+00 : f32
    %6 = vector.broadcast %cst_5 : f32 to vector<8x100xf32>
    %7 = arith.maximumf %5, %6 : vector<8x100xf32>
    %c0_6 = arith.constant 0 : index
    %c0_7 = arith.constant 0 : index
    %8 = vector.load %arg4[%c0_6, %c0_7] : memref<100x10xf32, #tpu.memory_space<vmem>>, vector<100x10xf32>
    %cst_8 = arith.constant dense<0.000000e+00> : vector<8x10xf32>
    %9 = tpu.matmul %7, %8, %cst_8 {dimension_numbers = #tpu.dot_dimension_numbers<[1], [0], [0], [1], [0, 0, 1, 1], [], []>} : vector<8x100xf32>, vector<100x10xf32>, vector<8x10xf32> -> vector<8x10xf32>
    %c0_9 = arith.constant 0 : index
    %c0_10 = arith.constant 0 : index
    %10 = vector.load %arg5[%c0_9, %c0_10] : memref<1x10xf32, #tpu.memory_space<vmem>>, vector<1x10xf32>
    %11 = vector.broadcast %10 : vector<1x10xf32> to vector<8x10xf32>
    %12 = arith.addf %9, %11 : vector<8x10xf32>
    %c0_11 = arith.constant 0 : index
    %c0_12 = arith.constant 0 : index
    %13 = vector.load %arg6[%c0_11, %c0_12] : memref<8x10xf32, #tpu.memory_space<vmem>>, vector<8x10xf32>
    tpu.vector_store %arg6[%c0_11, %c0_12], %12 {strides = array<i32>} : memref<8x10xf32, #tpu.memory_space<vmem>>, vector<8x10xf32>,
    return
  }
  func.func @transform_0(%arg0: i32) -> (i32, i32) {
    %c0_i32 = arith.constant 0 : i32
    %c0_i32_0 = arith.constant 0 : i32
    return %arg0, %c0_i32 : i32, i32
  }
  func.func @transform_1(%arg0: i32) -> (i32, i32) {
    %c0_i32 = arith.constant 0 : i32
    %c0_i32_0 = arith.constant 0 : i32
    %c0_i32_1 = arith.constant 0 : i32
    return %c0_i32, %c0_i32_0 : i32, i32
  }
  func.func @transform_2(%arg0: i32) -> (i32, i32) {
    %c0_i32 = arith.constant 0 : i32
    %c0_i32_0 = arith.constant 0 : i32
    %c0_i32_1 = arith.constant 0 : i32
    return %c0_i32, %c0_i32_0 : i32, i32
  }
  func.func @transform_3(%arg0: i32) -> (i32, i32) {
    %c0_i32 = arith.constant 0 : i32
    %c0_i32_0 = arith.constant 0 : i32
    %c0_i32_1 = arith.constant 0 : i32
    return %c0_i32, %c0_i32_0 : i32, i32
  }
  func.func @transform_4(%arg0: i32) -> (i32, i32) {
    %c0_i32 = arith.constant 0 : i32
    %c0_i32_0 = arith.constant 0 : i32
    %c0_i32_1 = arith.constant 0 : i32
    return %c0_i32, %c0_i32_0 : i32, i32
  }
  func.func @transform_5(%arg0: i32) -> (i32, i32) {
    %c0_i32 = arith.constant 0 : i32
    %c0_i32_0 = arith.constant 0 : i32
    return %arg0, %c0_i32 : i32, i32
  }
}

</mosaic_0001>

<bundles_post_ra>
// kernel: tpu_custom_call.1
= control target key start
LH: loop header
LB: loop body
LE: loop exit
PB: predicated region body
PF: predicated region fallthrough
CT: control target
= control target key end

     0   :  { %v389_v3 = vmov 0.0|0.0   ;;  %vm390_vm0 = vmmov 0   ;;  %v391_v6 = vmov 0.0   ;;  %s528_s0 = inlined_call_operand.vmem [shape: f32[8,100], index: 0, kind: input, shape index: {}]   ;;  %s529_s1 = inlined_call_operand.vmem [shape: f32[100,100], index: 1, kind: input, shape index: {}]   ;;  %s530_s2 = inlined_call_operand.vmem [shape: f32[1,100], index: 2, kind: input, shape index: {}]   ;;  %s531_s3 = inlined_call_operand.vmem [shape: f32[100,10], index: 3, kind: input, shape index: {}]   ;;  %s532_s4 = inlined_call_operand.vmem [shape: f32[1,10], index: 4, kind: input, shape index: {}]   ;;  %s533_s5 = inlined_call_operand.hbm [shape: f32[8,10], index: 5, kind: output, shape index: {}]  }
   0x1   :  { %v22_v0 = vld [vmem:[%s529_s1] sm:$0xff]  ;;  %v23_v1 = vld [vmem:[%s529_s1 + $0x8] sm:$0xff]  ;;  %v24_v2 = vld [vmem:[%s529_s1 + $0x10] sm:$0xff]  ;;  %325 = vmatprep.subr.bf16.mxu0 %v389_v3  ;;  %343 = vmatprep.subr.bf16.mxu1 %v389_v3 }
   0x2   :  { %v326_v4 = vpack.c.bf16 %v23_v1, %v22_v0  ;;  %v25_v5 = vld [vmem:[%s529_s1 + $0x18] sm:$0xff]  ;;  %293 = vmatprep.mubr.msk.f32.mxu0 %vm390_vm0, %v391_v6  ;;  %322 = vmatprep.mubr.msk.f32.mxu1 %vm390_vm0, %v391_v6  ;;  %v26_v8 = vld [vmem:[%s529_s1 + $0x20] sm:$0xff]  ;;  %v27_v9 = vld [vmem:[%s529_s1 + $0x28] sm:$0xff] }
   0x3   :  { %v329_v7 = vpack.c.bf16 %v25_v5, %v24_v2  ;;  %v121_v10 = vld [vmem:[%s531_s3] sm:$0xff]  ;;  %v122_v11 = vld [vmem:[%s531_s3 + $0x8] sm:$0xff]  ;;  %v123_v12 = vld [vmem:[%s531_s3 + $0x10] sm:$0xff]  ;;  %v332_v15 = vpack.c.bf16 %v27_v9, %v26_v8 }
   0x4   :  { %327 = vmatpush3.bf16.msra.mxu0 %v326_v4  ;;  %v124_v13 = vld [vmem:[%s531_s3 + $0x18] sm:$0xff]  ;;  %v344_v14 = vpack.c.bf16 %v122_v11, %v121_v10  ;;  %v28_v16 = vld [vmem:[%s529_s1 + $0x30] sm:$0xff] }
   0x5   :  { %328 = vmatprep.subr.bf16.mxu0 %v389_v3  ;;  %v29_v17 = vld [vmem:[%s529_s1 + $0x38] sm:$0xff]  ;;  %v347_v18 = vpack.c.bf16 %v124_v13, %v123_v12 }
   0x6   :  { %345 = vmatpush3.bf16.msra.mxu1 %v344_v14 }
   0x8   :  { %330 = vmatpush3.bf16.msra.mxu0 %v329_v7 }
   0x9   :  { %331 = vmatprep.subr.bf16.mxu0 %v389_v3 }
   0xa   :  { %10 = vsyncpa [#allocation3], 0  ;;  %346 = vmatprep.subr.bf16.mxu1 %v389_v3  ;;  %v125_v19 = vld [vmem:[%s531_s3 + $0x20] sm:$0xff]  ;;  %v126_v20 = vld [vmem:[%s531_s3 + $0x28] sm:$0xff]  ;;  %v335_v21 = vpack.c.bf16 %v29_v17, %v28_v16  ;;  %vm46_vm1 = vcmask 1043456   ;;  %vm42_vm2 = vcmask 818176  }
   0xb   :  { %v30_v22 = vld [vmem:[%s529_s1 + $0x40] sm:$0xff]  ;;  %v31_v23 = vld [vmem:[%s529_s1 + $0x48] sm:$0xff]  ;;  %348 = vmatpush3.bf16.msra.mxu1 %v347_v18  ;;  %v350_v24 = vpack.c.bf16 %v126_v20, %v125_v19  ;;  %v127_v25 = vld [vmem:[%s531_s3 + $0x30] sm:$0xff]  ;;  %s392_s24 = smov [#allocation2]   ;;  %vm217_vm3 = vcmask 80896  }
   0xc   :  { %333 = vmatpush3.bf16.msra.mxu0 %v332_v15  ;;  %349 = vmatprep.subr.bf16.mxu1 %v389_v3  ;;  %v128_v26 = vld [vmem:[%s531_s3 + $0x38] sm:$0xff]  ;;  %v338_v27 = vpack.c.bf16 %v31_v23, %v30_v22  ;;  %v32_v28 = vld [vmem:[%s529_s1 + $0x50] sm:$0xff]  ;;  %v129_v31 = vld [vmem:[%s531_s3 + $0x40] sm:$0xff]  ;;  %s225_s25 = sshll.u32 %s392_s24, 4  ;;  %s226_s25 = int_to_ptr.vmem [resolvable:$true] %s225_s25 }
   0xd   :  { %334 = vmatprep.subr.bf16.mxu0 %v389_v3  ;;  %v33_v29 = vld [vmem:[%s529_s1 + $0x58] sm:$0xff]  ;;  %v353_v30 = vpack.c.bf16 %v128_v26, %v127_v25  ;;  %v130_v32 = vld [vmem:[%s531_s3 + $0x48] sm:$0xff]  ;;  %v34_v35 = vld [vmem:[%s529_s1 + $0x60] sm:$0xf]  ;;  %p370_p1 = scmp.lt.s32.totalorder %s226_s25, %s226_s25 }
   0xe   :  { %v341_v33 = vpack.c.bf16 %v33_v29, %v32_v28  ;;  %v356_v34 = vpack.c.bf16 %v130_v32, %v129_v31  ;;  %v21_v36 = vld [vmem:[%s528_s0] sm:$0xff]  ;;  %v131_v37 = vld [vmem:[%s531_s3 + $0x50] sm:$0xff]  ;;  %v132_v38 = vld [vmem:[%s531_s3 + $0x58] sm:$0xff] }
   0xf   :  { %351 = vmatpush3.bf16.msra.mxu1 %v350_v24  ;;  %v359_v39 = vpack.c.bf16 %v132_v38, %v131_v37  ;;  %v133_v40 = vld [vmem:[%s531_s3 + $0x60] sm:$0xf]  ;;  %s365_s3 = scalar_lea.vmem %s226_s25, 128 }
  0x10   :  { %336 = vmatpush3.bf16.msra.mxu0 %v335_v21  ;;  %352 = vmatprep.subr.bf16.mxu1 %v389_v3  ;;  %v233_v41 = vld [vmem:[%s530_s2] ss:$0 sm:$0xff]  ;;  %p366_p0 = scmp.ne.s32.totalorder %s226_s25, %s365_s3  ;;  %p371_p2 = scmp.lt.s32.totalorder %s365_s3, %s365_s3 }
  0x11   :  { %337 = vmatprep.subr.bf16.mxu0 %v389_v3  ;;  %v236_v46 = vld [vmem:[%s532_s4] ss:$0 sm:$0xff] }
  0x12   :  { %p372_p3 = por %p371_p2, %p370_p1 }
  0x13   :  { %354 = vmatpush3.bf16.msra.mxu1 %v353_v30 }
  0x14   :  { %339 = vmatpush3.bf16.msra.mxu0 %v338_v27  ;;  %355 = vmatprep.subr.bf16.mxu1 %v389_v3  ;;  %p373_p4 = pnand %p372_p3, %p366_p0 }
  0x15   :  { %340 = vmatprep.subr.bf16.mxu0 %v389_v3 }
  0x17   :  { %357 = vmatpush3.bf16.msra.mxu1 %v356_v34 }
  0x18   :  { %342 = vmatpush3.bf16.msra.mxu0 %v341_v33  ;;  %358 = vmatprep.subr.bf16.mxu1 %v389_v3 }
  0x19   :  { %291 = vmatprep.subr.mxu0 %v391_v6 }
  0x1b   :  { %360 = vmatpush3.bf16.msra.mxu1 %v359_v39 }
  0x1c   :  { %292 = vmatpush3.msk.msra.mxu0 %vm46_vm1, %v34_v35  ;;  %320 = vmatprep.subr.mxu1 %v391_v6 }
  0x1d   :  { %294 = vmatmul.mubr.msk.f32.vlgmr.msra.gmra.mrb[0].mxu0 %vm42_vm2, %v21_v36 }
  0x1f   :  { %321 = vmatpush3.msk.msra.mxu1 %vm46_vm1, %v133_v40 }
  0xf0   :  { %v116_v42 = vpop.f32.mrb[0].mxu0 }
  0xf1   :  { %v117_v43 = vadd.f32 %v233_v41, %v116_v42  ;;  %v295_v44 = vpop.f32.mrb[1].mxu0 }
  0xf3   :  { %v120_v45 = vmax.f32 %v117_v43, 0.0 }
  0xf5   :  { %323 = vmatmul.mubr.msk.f32.vlgmr.msra.gmra.mrb[0].mxu1 %vm42_vm2, %v120_v45 }
 0x1c8   :  { %v213_v47 = vpop.f32.mrb[0].mxu1 }
 0x1c9   :  { %v214_v48 = vadd.f32 %v236_v46, %v213_v47  ;;  %v324_v49 = vpop.f32.mrb[1].mxu1 }
 0x1cb   :  { %218 = vst.msk [vmem:[#allocation2] sm:$0xff] %vm217_vm3, %v214_v48 }
 0x1cc   :  { %376 = shalt.err (!%p373_p4)
}
 0x1cd   :  { %s377_s27 = scalar_lea.hbm %s533_s5, 128 }
 0x1ce   :  { %p378_p5 = scmp.ne.s32.totalorder %s533_s5, %s377_s27  ;;  %p381_p6 = scmp.lt.u32.totalorder %s377_s27, %s533_s5 }
 0x1d0   :  { %p383_p7 = pnand %p381_p6, %p378_p5 }
 0x1d2   :  { %386 = shalt.err (!%p383_p7)
}
 0x1d3   :  { %228 = dma.vmem_to_hbm [thread:$0]  %s226_s25, 128, %s533_s5, [#allocation3]  }
 0x1d4   :  { %387 = dma.done.wait [#allocation3], 128  }
 0x1d5   :  { %388 = vsyncadd [#allocation3], 4294967168 }
 0x1d6   :  { %232 = vsyncpa [#allocation3], 1 }

</bundles_post_ra>
